<compile_context>
chip_gen: v5e
topology: v5e:2x2
jax: 0.10.0
libtpu: 0.0.40
codegen_flags: <defaults>
</compile_context>

<pallas_src>
import functools

import jax
import jax.numpy as jnp
from jax.experimental import pallas as pl
from jax.experimental.pallas import tpu as pltpu


_DEFAULT_BATCH_TILE = 2048   # big tile: amortize ~0.35us/grid-step + MXU fill/drain
_SINGLE_BLOCK_MAX = 256      # below this the whole batch is one block (grid=(1,))
_MIN_PALLAS_BATCH = 64       # below this -> pure-JAX fallback (launch overhead)


def _round_up(n, m):
    return ((n + m - 1) // m) * m


def _bf16_eltwise_supported():
    """bf16 VPU elementwise exists on v6e/v7x; v5e and older stay f32."""
    try:
        kind = jax.devices()[0].device_kind.lower()
    except Exception:
        return False
    return ("v6" in kind) or ("v7" in kind) or ("7x" in kind)


def _pick_batch_tile(batch, requested):
    """Batch tile for the sublane axis of x and the lane axis of the [nd, B]
    transposed output.

    * tile must be a multiple of 128 (lane-dense output block) unless it equals
      the full batch (block == full array dim is always legal).
    * auto mode keeps the grid even so v7x's two TensorCores get balanced work
      under dimension_semantics=("parallel",); v5e/v6e (1 TC) are unaffected.
    """
    if requested is not None:
        if requested >= batch:
            return batch
        return max(128, (requested // 128) * 128)
    if batch <= _SINGLE_BLOCK_MAX:
        return batch
    n_tiles = 2 * pl.cdiv(batch, 2 * _DEFAULT_BATCH_TILE)    # even by construction
    return min(batch, _round_up(pl.cdiv(batch, n_tiles), 128))


def _vmem_limit_bytes(tile, f, nd):
    """Scoped-VMEM budget: double-buffered x/out tiles + resident weights +
    in-kernel activations, with headroom — capped below the physical per-core
    VMEM (64 MiB on v7x) so Mosaic keeps room for its own scratch."""
    io = 2 * tile * f * 4 + 2 * nd * tile * 4             # f32 x tile + f32 out tile
    w_elems = f * 3 * f + 3 * f * 5 * f + 5 * f * 3 * f + 3 * f * nd
    b_elems = 3 * f + 5 * f + 3 * f + nd
    weights = 2 * (w_elems * 2 + b_elems * 4)              # bf16 W / f32 b, 2x buffers
    acts = tile * (3 * f + 5 * f + 3 * f) * (4 + 2)        # f32 accum + bf16 copies
    budget = 2 * (io + weights + acts) + (4 << 20)
    try:
        cap = (pltpu.get_tpu_info().vmem_capacity_bytes * 3) // 4
    except Exception:
        cap = 48 << 20                                     # conservative (v7x: 64 MiB/TC)
    return int(max(16 << 20, min(cap, budget)))


def _mlp_kernel(x_ref, w1_ref, b1_ref, w2_ref, b2_ref, w3_ref, b3_ref,
                w4_ref, b4_ref, out_ref, *, bf16_eltwise):
    """One batch tile: 3x (Linear + ReLU) + final Linear head.

    x arrives as f32 and is cast to bf16 in-kernel.  MXU matmuls are
    bf16 x bf16 with f32 accumulation.  The result tile is transposed to
    [nd, tile] so the HBM store is lane-dense (unmasked vst).  Dropout is
    eval-mode identity.  No cross-tile accumulator exists, so garbage rows of
    a partial last tile only touch their own (masked) output columns.
    """
    x = x_ref[...].astype(jnp.bfloat16)

    def linear_relu(h, w_ref, b_ref):
        acc = jnp.dot(h, w_ref[...], preferred_element_type=jnp.float32)
        if bf16_eltwise:
            # v6e/v7x: bf16 VPU -> half the activation bytes / lane passes.
            return jnp.maximum(acc.astype(jnp.bfloat16)
                               + b_ref[...].astype(jnp.bfloat16), 0.0)
        # v5e has no bf16 VPU: bias-add/ReLU in f32, single cast for the MXU.
        return jnp.maximum(acc + b_ref[...], 0.0).astype(jnp.bfloat16)

    h = linear_relu(x, w1_ref, b1_ref)        # Linear(F -> 3F)   + ReLU
    h = linear_relu(h, w2_ref, b2_ref)        # Linear(3F -> 5F)  + ReLU
    h = linear_relu(h, w3_ref, b3_ref)        # Linear(5F -> 3F)  + ReLU
    t = jnp.dot(h, w4_ref[...], preferred_element_type=jnp.float32) + b4_ref[...]
    out_ref[...] = t.T.astype(out_ref.dtype)  # [nd, tile]; XLU transpose, dense store


@functools.partial(jax.jit, static_argnames=("tile", "bf16_eltwise"))
def _fcnn_pallas(x, params, *, tile, bf16_eltwise):
    B, F = x.shape
    nd = params["w4"].shape[1]

    w = {k: v.astype(jnp.bfloat16) for k, v in params.items() if k.startswith("w")}
    b = {k: v.astype(jnp.float32) for k, v in params.items() if k.startswith("b")}

    grid = (pl.cdiv(B, tile),)
    row_map = lambda i: (i, 0)     # x: batch on sublanes
    col_map = lambda i: (0, i)     # out: batch on lanes (lane-dense store)
    const = lambda a: pl.BlockSpec(a.shape, lambda i: (0, 0))   # resident weights
    # TODO(synk): for large num_feat, pass pipeline_mode=pl.Buffered(1) on the
    # constant weight specs to drop the pointless double-buffer copy.

    flops = 2 * B * (F * 3 * F + 3 * F * 5 * F + 5 * F * 3 * F + 3 * F * nd)
    w_bytes = sum(int(v.size) for v in w.values()) * 2
    b_bytes = sum(int(v.size) for v in b.values()) * 4
    bytes_accessed = int(B * F * 4 + w_bytes + b_bytes + B * nd * 4)

    kernel = functools.partial(_mlp_kernel, bf16_eltwise=bf16_eltwise)
    out_t = pl.pallas_call(
        kernel,
        out_shape=jax.ShapeDtypeStruct((nd, B), x.dtype),
        grid_spec=pltpu.PrefetchScalarGridSpec(
            num_scalar_prefetch=0,
            grid=grid,
            in_specs=[
                pl.BlockSpec((tile, F), row_map),      # f32 x tile, pipelined
                const(w["w1"]), const(b["b1"]),
                const(w["w2"]), const(b["b2"]),
                const(w["w3"]), const(b["b3"]),
                const(w["w4"]), const(b["b4"]),
            ],
            out_specs=pl.BlockSpec((nd, tile), col_map),
        ),
        compiler_params=pltpu.CompilerParams(
            dimension_semantics=("parallel",),         # batch axis -> v7x megacore
            vmem_limit_bytes=_vmem_limit_bytes(tile, F, nd)),
        cost_estimate=pl.CostEstimate(flops=flops, transcendentals=0,
                                      bytes_accessed=bytes_accessed),
    )(x, w["w1"], b["b1"], w["w2"], b["b2"], w["w3"], b["b3"], w["w4"], b["b4"])
    # Tiny [nd, B] -> [B, nd] transpose to keep the module's output layout;
    # B*nd*4 bytes, negligible vs. the dense-store win inside the kernel.
    return out_t.T


def _recipe_forward(x, params, bf16_eltwise):
    """Pure-JAX forward matching the kernel's numeric recipe exactly
    (bf16 MXU operands, f32 accumulation, eval-mode dropout)."""
    bf = jnp.bfloat16
    h = x.astype(bf)
    for i in (1, 2, 3):
        acc = jnp.dot(h, params[f"w{i}"].astype(bf),
                      preferred_element_type=jnp.float32)
        if bf16_eltwise:
            h = jnp.maximum(acc.astype(bf) + params[f"b{i}"].astype(bf), 0.0)
        else:
            h = jnp.maximum(acc + params[f"b{i}"], 0.0).astype(bf)
    out = jnp.dot(h, params["w4"].astype(bf),
                  preferred_element_type=jnp.float32) + params["b4"]
    return out.astype(x.dtype)


@functools.partial(jax.jit, static_argnames=("bf16_eltwise",))
def _forward_jax(x, params, *, bf16_eltwise):
    return _recipe_forward(x, params, bf16_eltwise)


def fcnn_surv_time(x, params, *, batch_tile=None, use_pallas=None):
    """Forward pass of FCNNSurv_time.

    x:      [B, num_feat] float32
    params: dict w1..w4 ([in, out]) and b1..b4 ([1, out])
    returns [B, num_diseases]
    """
    B = x.shape[0]
    bf16_eltwise = _bf16_eltwise_supported()
    if use_pallas is None:
        use_pallas = B >= _MIN_PALLAS_BATCH
    if not use_pallas:
        # Tiny batches: a standalone pallas_call is pure launch/DMA-setup
        # overhead; use a plain-JAX path with the same numeric recipe (or fuse
        # this head into the surrounding model).
        return _forward_jax(x, params, bf16_eltwise=bf16_eltwise)
    tile = _pick_batch_tile(B, batch_tile)
    return _fcnn_pallas(x, params, tile=tile, bf16_eltwise=bf16_eltwise)


def init_params(key, num_feat, num_diseases):
    """Deterministic synthetic parameters (shapes match the nn.Linear layers).

    NOTE: biases are stored as [1, out]; converting a real PyTorch checkpoint
    requires W_jax = W_pt.T and b_jax = b_pt.reshape(1, -1).
    """
    dims = [
        (num_feat, num_feat * 3),
        (num_feat * 3, num_feat * 5),
        (num_feat * 5, num_feat * 3),
        (num_feat * 3, num_diseases),
    ]
    params = {}
    for i, (fin, fout) in enumerate(dims, start=1):
        key, kw, kb = jax.random.split(key, 3)
        bound = 1.0 / (fin ** 0.5)  # PyTorch Linear default init range
        params[f"w{i}"] = jax.random.uniform(
            kw, (fin, fout), jnp.float32, minval=-bound, maxval=bound)
        params[f"b{i}"] = jax.random.uniform(
            kb, (1, fout), jnp.float32, minval=-bound, maxval=bound)
    return params


def _reference_forward_f32(x, params):
    """Pure-JAX f32 reference (eval-mode dropout == identity)."""
    h = jnp.maximum(x @ params["w1"] + params["b1"], 0.0)
    h = jnp.maximum(h @ params["w2"] + params["b2"], 0.0)
    h = jnp.maximum(h @ params["w3"] + params["b3"], 0.0)
    return h @ params["w4"] + params["b4"]


if __name__ == "__main__":
    num_feat = 32
    num_diseases = 8

    key = jax.random.PRNGKey(0)
    key, kp = jax.random.split(key)
    params = init_params(kp, num_feat, num_diseases)
    bf16_elt = _bf16_eltwise_supported()

    def check(out, x, atol_recipe=2e-3, atol_f32=1.5e-1):
        assert out.shape == (x.shape[0], num_diseases)
        ref_recipe = _recipe_forward(x, params, bf16_elt)
        assert jnp.allclose(out, ref_recipe, atol=atol_recipe, rtol=atol_recipe), \
            "mismatch vs. kernel-recipe reference"
        ref_f32 = _reference_forward_f32(x, params)
        assert jnp.allclose(out, ref_f32, atol=atol_f32, rtol=atol_f32), \
            "mismatch vs. f32 reference"

    # Case 1: spec-small batch=2, Pallas path forced (grid=(1,), full-batch block).
    key, k1 = jax.random.split(key)
    x_small = jax.random.normal(k1, (2, num_feat), jnp.float32)
    out_small = jax.block_until_ready(
        fcnn_surv_time(x_small, params, use_pallas=True))
    check(out_small, x_small)

    # Case 2: batch=2 with auto dispatch -> pure-JAX fallback (launch-overhead guard).
    out_fb = jax.block_until_ready(fcnn_surv_time(x_small, params))
    check(out_fb, x_small)

    # Case 3: batch=272, explicit tile=128 -> grid=(3,), pipelined x-tile DMAs,
    # partial last tile with masked lane store on the [nd, tile] output block.
    key, k2 = jax.random.split(key)
    x_mid = jax.random.normal(k2, (272, num_feat), jnp.float32)
    out_mid = jax.block_until_ready(
        fcnn_surv_time(x_mid, params, batch_tile=128))
    check(out_mid, x_mid)

    # Case 4: batch=1040, auto tiling -> tile=640 (128-aligned), even grid=(2,)
    # for v7x two-TensorCore balance under dimension_semantics=("parallel",).
    key, k3 = jax.random.split(key)
    x_big = jax.random.normal(k3, (1040, num_feat), jnp.float32)
    out_big = jax.block_until_ready(fcnn_surv_time(x_big, params))
    check(out_big, x_big)

    print("KERNEL_OK")
</pallas_src>

<mosaic_0001>
module attributes {stable_mosaic.version = 11 : i64} {
  func.func @_mlp_kernel(%arg0: i32, %arg1: memref<2x32xf32, #tpu.memory_space<vmem>>, %arg2: memref<32x96xbf16, #tpu.memory_space<vmem>>, %arg3: memref<1x96xf32, #tpu.memory_space<vmem>>, %arg4: memref<96x160xbf16, #tpu.memory_space<vmem>>, %arg5: memref<1x160xf32, #tpu.memory_space<vmem>>, %arg6: memref<160x96xbf16, #tpu.memory_space<vmem>>, %arg7: memref<1x96xf32, #tpu.memory_space<vmem>>, %arg8: memref<96x8xbf16, #tpu.memory_space<vmem>>, %arg9: memref<1x8xf32, #tpu.memory_space<vmem>>, %arg10: memref<8x2xf32, #tpu.memory_space<vmem>>) attributes {dimension_semantics = [#tpu.dimension_semantics<parallel>], iteration_bounds = array<i64: 1>, scalar_prefetch = 0 : i64, scratch_operands = 0 : i64, tpu.core_type = #tpu.core_type<tc>, window_params = [{transform_indices = @transform_0, window_bounds = array<i64: 2, 32>}, {pipeline_mode = #tpu.pipeline_mode<synchronous>, transform_indices = @transform_1, window_bounds = array<i64: 32, 96>}, {pipeline_mode = #tpu.pipeline_mode<synchronous>, transform_indices = @transform_2, window_bounds = array<i64: 1, 96>}, {pipeline_mode = #tpu.pipeline_mode<synchronous>, transform_indices = @transform_3, window_bounds = array<i64: 96, 160>}, {pipeline_mode = #tpu.pipeline_mode<synchronous>, transform_indices = @transform_4, window_bounds = array<i64: 1, 160>}, {pipeline_mode = #tpu.pipeline_mode<synchronous>, transform_indices = @transform_5, window_bounds = array<i64: 160, 96>}, {pipeline_mode = #tpu.pipeline_mode<synchronous>, transform_indices = @transform_6, window_bounds = array<i64: 1, 96>}, {pipeline_mode = #tpu.pipeline_mode<synchronous>, transform_indices = @transform_7, window_bounds = array<i64: 96, 8>}, {pipeline_mode = #tpu.pipeline_mode<synchronous>, transform_indices = @transform_8, window_bounds = array<i64: 1, 8>}, {transform_indices = @transform_9, window_bounds = array<i64: 8, 2>}]} {
    %c0 = arith.constant 0 : index
    %c0_0 = arith.constant 0 : index
    %0 = vector.load %arg1[%c0, %c0_0] : memref<2x32xf32, #tpu.memory_space<vmem>>, vector<2x32xf32>
    %1 = arith.truncf %0 : vector<2x32xf32> to vector<2x32xbf16>
    %c0_1 = arith.constant 0 : index
    %c0_2 = arith.constant 0 : index
    %2 = vector.load %arg2[%c0_1, %c0_2] : memref<32x96xbf16, #tpu.memory_space<vmem>>, vector<32x96xbf16>
    %cst = arith.constant dense<0.000000e+00> : vector<2x96xf32>
    %3 = tpu.matmul %1, %2, %cst {dimension_numbers = #tpu.dot_dimension_numbers<[1], [0], [0], [1], [0, 0, 1, 1], [], []>} : vector<2x32xbf16>, vector<32x96xbf16>, vector<2x96xf32> -> vector<2x96xf32>
    %c0_3 = arith.constant 0 : index
    %c0_4 = arith.constant 0 : index
    %4 = vector.load %arg3[%c0_3, %c0_4] : memref<1x96xf32, #tpu.memory_space<vmem>>, vector<1x96xf32>
    %5 = vector.broadcast %4 : vector<1x96xf32> to vector<2x96xf32>
    %6 = arith.addf %3, %5 : vector<2x96xf32>
    %cst_5 = arith.constant 0.000000e+00 : f32
    %7 = vector.broadcast %cst_5 : f32 to vector<2x96xf32>
    %8 = arith.maximumf %6, %7 : vector<2x96xf32>
    %9 = arith.truncf %8 : vector<2x96xf32> to vector<2x96xbf16>
    %c0_6 = arith.constant 0 : index
    %c0_7 = arith.constant 0 : index
    %10 = vector.load %arg4[%c0_6, %c0_7] : memref<96x160xbf16, #tpu.memory_space<vmem>>, vector<96x160xbf16>
    %cst_8 = arith.constant dense<0.000000e+00> : vector<2x160xf32>
    %11 = tpu.matmul %9, %10, %cst_8 {dimension_numbers = #tpu.dot_dimension_numbers<[1], [0], [0], [1], [0, 0, 1, 1], [], []>} : vector<2x96xbf16>, vector<96x160xbf16>, vector<2x160xf32> -> vector<2x160xf32>
    %c0_9 = arith.constant 0 : index
    %c0_10 = arith.constant 0 : index
    %12 = vector.load %arg5[%c0_9, %c0_10] : memref<1x160xf32, #tpu.memory_space<vmem>>, vector<1x160xf32>
    %13 = vector.broadcast %12 : vector<1x160xf32> to vector<2x160xf32>
    %14 = arith.addf %11, %13 : vector<2x160xf32>
    %cst_11 = arith.constant 0.000000e+00 : f32
    %15 = vector.broadcast %cst_11 : f32 to vector<2x160xf32>
    %16 = arith.maximumf %14, %15 : vector<2x160xf32>
    %17 = arith.truncf %16 : vector<2x160xf32> to vector<2x160xbf16>
    %c0_12 = arith.constant 0 : index
    %c0_13 = arith.constant 0 : index
    %18 = vector.load %arg6[%c0_12, %c0_13] : memref<160x96xbf16, #tpu.memory_space<vmem>>, vector<160x96xbf16>
    %cst_14 = arith.constant dense<0.000000e+00> : vector<2x96xf32>
    %19 = tpu.matmul %17, %18, %cst_14 {dimension_numbers = #tpu.dot_dimension_numbers<[1], [0], [0], [1], [0, 0, 1, 1], [], []>} : vector<2x160xbf16>, vector<160x96xbf16>, vector<2x96xf32> -> vector<2x96xf32>
    %c0_15 = arith.constant 0 : index
    %c0_16 = arith.constant 0 : index
    %20 = vector.load %arg7[%c0_15, %c0_16] : memref<1x96xf32, #tpu.memory_space<vmem>>, vector<1x96xf32>
    %21 = vector.broadcast %20 : vector<1x96xf32> to vector<2x96xf32>
    %22 = arith.addf %19, %21 : vector<2x96xf32>
    %cst_17 = arith.constant 0.000000e+00 : f32
    %23 = vector.broadcast %cst_17 : f32 to vector<2x96xf32>
    %24 = arith.maximumf %22, %23 : vector<2x96xf32>
    %25 = arith.truncf %24 : vector<2x96xf32> to vector<2x96xbf16>
    %c0_18 = arith.constant 0 : index
    %c0_19 = arith.constant 0 : index
    %26 = vector.load %arg8[%c0_18, %c0_19] : memref<96x8xbf16, #tpu.memory_space<vmem>>, vector<96x8xbf16>
    %cst_20 = arith.constant dense<0.000000e+00> : vector<2x8xf32>
    %27 = tpu.matmul %25, %26, %cst_20 {dimension_numbers = #tpu.dot_dimension_numbers<[1], [0], [0], [1], [0, 0, 1, 1], [], []>} : vector<2x96xbf16>, vector<96x8xbf16>, vector<2x8xf32> -> vector<2x8xf32>
    %c0_21 = arith.constant 0 : index
    %c0_22 = arith.constant 0 : index
    %28 = vector.load %arg9[%c0_21, %c0_22] : memref<1x8xf32, #tpu.memory_space<vmem>>, vector<1x8xf32>
    %29 = vector.broadcast %28 : vector<1x8xf32> to vector<2x8xf32>
    %30 = arith.addf %27, %29 : vector<2x8xf32>
    %31 = tpu.transpose %30, [1, 0] : vector<2x8xf32> -> vector<8x2xf32>
    %c0_23 = arith.constant 0 : index
    %c0_24 = arith.constant 0 : index
    %32 = vector.load %arg10[%c0_23, %c0_24] : memref<8x2xf32, #tpu.memory_space<vmem>>, vector<8x2xf32>
    tpu.vector_store %arg10[%c0_23, %c0_24], %31 {strides = array<i32>} : memref<8x2xf32, #tpu.memory_space<vmem>>, vector<8x2xf32>,
    return
  }
  func.func @transform_0(%arg0: i32) -> (i32, i32) {
    %c0_i32 = arith.constant 0 : i32
    %c0_i32_0 = arith.constant 0 : i32
    return %arg0, %c0_i32 : i32, i32
  }
  func.func @transform_1(%arg0: i32) -> (i32, i32) {
    %c0_i32 = arith.constant 0 : i32
    %c0_i32_0 = arith.constant 0 : i32
    %c0_i32_1 = arith.constant 0 : i32
    return %c0_i32, %c0_i32_0 : i32, i32
  }
  func.func @transform_2(%arg0: i32) -> (i32, i32) {
    %c0_i32 = arith.constant 0 : i32
    %c0_i32_0 = arith.constant 0 : i32
    %c0_i32_1 = arith.constant 0 : i32
    return %c0_i32, %c0_i32_0 : i32, i32
  }
  func.func @transform_3(%arg0: i32) -> (i32, i32) {
    %c0_i32 = arith.constant 0 : i32
    %c0_i32_0 = arith.constant 0 : i32
    %c0_i32_1 = arith.constant 0 : i32
    return %c0_i32, %c0_i32_0 : i32, i32
  }
  func.func @transform_4(%arg0: i32) -> (i32, i32) {
    %c0_i32 = arith.constant 0 : i32
    %c0_i32_0 = arith.constant 0 : i32
    %c0_i32_1 = arith.constant 0 : i32
    return %c0_i32, %c0_i32_0 : i32, i32
  }
  func.func @transform_5(%arg0: i32) -> (i32, i32) {
    %c0_i32 = arith.constant 0 : i32
    %c0_i32_0 = arith.constant 0 : i32
    %c0_i32_1 = arith.constant 0 : i32
    return %c0_i32, %c0_i32_0 : i32, i32
  }
  func.func @transform_6(%arg0: i32) -> (i32, i32) {
    %c0_i32 = arith.constant 0 : i32
    %c0_i32_0 = arith.constant 0 : i32
    %c0_i32_1 = arith.constant 0 : i32
    return %c0_i32, %c0_i32_0 : i32, i32
  }
  func.func @transform_7(%arg0: i32) -> (i32, i32) {
    %c0_i32 = arith.constant 0 : i32
    %c0_i32_0 = arith.constant 0 : i32
    %c0_i32_1 = arith.constant 0 : i32
    return %c0_i32, %c0_i32_0 : i32, i32
  }
  func.func @transform_8(%arg0: i32) -> (i32, i32) {
    %c0_i32 = arith.constant 0 : i32
    %c0_i32_0 = arith.constant 0 : i32
    %c0_i32_1 = arith.constant 0 : i32
    return %c0_i32, %c0_i32_0 : i32, i32
  }
  func.func @transform_9(%arg0: i32) -> (i32, i32) {
    %c0_i32 = arith.constant 0 : i32
    %c0_i32_0 = arith.constant 0 : i32
    return %c0_i32, %arg0 : i32, i32
  }
}

</mosaic_0001>

<bundles_post_ra>
// kernel: _fcnn_pallas.1
= control target key start
LH: loop header
LB: loop body
LE: loop exit
PB: predicated region body
PF: predicated region fallthrough
CT: control target
= control target key end

     0   :  { %vm55_vm0 = vcmask 261120   ;;  %vm152_vm1 = vcmask 785408   ;;  %vm401_vm2 = vcmask 15360   ;;  %s765_s1 = inlined_call_operand.vmem [shape: bf16[32,96], index: 1, kind: input, shape index: {}]   ;;  %s766_s0 = inlined_call_operand.vmem [shape: f32[2,32], index: 0, kind: input, shape index: {}]   ;;  %s767_s3 = inlined_call_operand.vmem [shape: bf16[96,160], index: 3, kind: input, shape index: {}]   ;;  %s768_s2 = inlined_call_operand.vmem [shape: f32[1,96], index: 2, kind: input, shape index: {}]   ;;  %s769_s5 = inlined_call_operand.vmem [shape: bf16[160,96], index: 5, kind: input, shape index: {}]   ;;  %s770_s6 = inlined_call_operand.vmem [shape: f32[1,96], index: 6, kind: input, shape index: {}]   ;;  %s771_s7 = inlined_call_operand.vmem [shape: bf16[96,8], index: 7, kind: input, shape index: {}]   ;;  %s772_s4 = inlined_call_operand.vmem [shape: f32[1,160], index: 4, kind: input, shape index: {}]   ;;  %s773_s8 = inlined_call_operand.vmem [shape: f32[1,8], index: 8, kind: input, shape index: {}]   ;;  %s774_s9 = inlined_call_operand.vmem [shape: f32[8,2], index: 9, kind: output, shape index: {}]  }
   0x1   :  { %v533_v0 = vld [vmem:[%s765_s1 + $0x8] sm:$0xff]  ;;  %v458_v1 = vld [vmem:[%s767_s3 + $0x50] sm:$0xf]  ;;  %v545_v2 = vld [vmem:[%s767_s3 + $0x54] sm:$0xf0] }
   0x2   :  { %v544_v3 = vld [vmem:[%s767_s3 + $0x54] sm:$0xf]  ;;  %65 = vmatpush.bf16.msra.mxu1 %v533_v0  ;;  %v532_v4 = vld [vmem:[%s765_s1] sm:$0xff]  ;;  %v460_v6 = vld [vmem:[%s767_s3 + $0x58] sm:$0xf0]  ;;  %v459_v7 = vor.u32 %v545_v2, %v458_v1 }
   0x3   :  { %v33_v5 = vld [vmem:[%s766_s0] sm:$0x3]  ;;  %v463_v8 = vor.u32 %v544_v3, %v460_v6  ;;  %v542_v9 = vld [vmem:[%s767_s3 + $0x44] sm:$0xf]  ;;  %v452_v10 = vld [vmem:[%s767_s3 + $0x48] sm:$0xf0] }
   0x4   :  { %v450_v11 = vld [vmem:[%s767_s3 + $0x40] sm:$0xf]  ;;  %v543_v12 = vld [vmem:[%s767_s3 + $0x44] sm:$0xf0]  ;;  %v34_v13 = vpack.c.bf16 %v33_v5, %v33_v5  ;;  %v455_v14 = vor.u32 %v542_v9, %v452_v10  ;;  %v540_v15 = vld [vmem:[%s767_s3 + $0x34] sm:$0xf] }
   0x5   :  { %171 = vmatpush.bf16.msra.mxu2 %v463_v8  ;;  %v444_v16 = vld [vmem:[%s767_s3 + $0x38] sm:$0xf0]  ;;  %v451_v17 = vor.u32 %v543_v12, %v450_v11  ;;  %v442_v18 = vld [vmem:[%s767_s3 + $0x30] sm:$0xf]  ;;  %v541_v19 = vld [vmem:[%s767_s3 + $0x34] sm:$0xf0] }
   0x6   :  { %66 = vmatpush.bf16.msra.mxu1 %v532_v4  ;;  %v447_v20 = vor.u32 %v540_v15, %v444_v16  ;;  %v538_v21 = vld [vmem:[%s767_s3 + $0x24] sm:$0xf]  ;;  %v436_v22 = vld [vmem:[%s767_s3 + $0x28] sm:$0xf0]  ;;  %v443_v23 = vor.u32 %v541_v19, %v442_v18  ;;  %v434_v24 = vld [vmem:[%s767_s3 + $0x20] sm:$0xf] }
   0x7   :  { %v539_v25 = vld [vmem:[%s767_s3 + $0x24] sm:$0xf0]  ;;  %v439_v26 = vor.u32 %v538_v21, %v436_v22  ;;  %v426_v28 = vld [vmem:[%s767_s3 + $0x10] sm:$0xf]  ;;  %v537_v29 = vld [vmem:[%s767_s3 + $0x14] sm:$0xf0] }
   0x8   :  { %v435_v27 = vor.u32 %v539_v25, %v434_v24  ;;  %v536_v30 = vld [vmem:[%s767_s3 + $0x14] sm:$0xf]  ;;  %v427_v31 = vor.u32 %v537_v29, %v426_v28  ;;  %v428_v32 = vld [vmem:[%s767_s3 + $0x18] sm:$0xf0]  ;;  %v418_v34 = vld [vmem:[%s767_s3] sm:$0xf] }
   0x9   :  { %415 = vmatmul.msk.bf16.vlgmr.msra.gmra.mxu1 %vm55_vm0, %v34_v13  ;;  %172 = vmatpush.bf16.msra.mxu2 %v455_v14  ;;  %v431_v33 = vor.u32 %v536_v30, %v428_v32  ;;  %v535_v35 = vld [vmem:[%s767_s3 + $0x4] sm:$0xf0]  ;;  %v534_v36 = vld [vmem:[%s767_s3 + $0x4] sm:$0xf]  ;;  %v420_v38 = vld [vmem:[%s767_s3 + $0x8] sm:$0xf0] }
   0xa   :  { %158 = vmatpush.bf16.msrb.mxu1 %v459_v7  ;;  %v419_v37 = vor.u32 %v535_v35, %v418_v34  ;;  %v423_v39 = vor.u32 %v534_v36, %v420_v38  ;;  %v553_v40 = vld [vmem:[%s769_s5 + $0x38] sm:$0xff]  ;;  %v552_v41 = vld [vmem:[%s769_s5 + $0x30] sm:$0xff]  ;;  %v551_v42 = vld [vmem:[%s769_s5 + $0x28] sm:$0xff] }
   0xb   :  { %273 = vmatpush.bf16.msra.mxu3 %v553_v40  ;;  %v550_v43 = vld [vmem:[%s769_s5 + $0x20] sm:$0xff]  ;;  %v549_v44 = vld [vmem:[%s769_s5 + $0x18] sm:$0xff]  ;;  %v548_v45 = vld [vmem:[%s769_s5 + $0x10] sm:$0xff] }
   0xc   :  { %v563_v46 = vld [vmem:[%s768_s2] ss:$0 sm:$0xff]  ;;  %v547_v52 = vld [vmem:[%s769_s5 + $0x8] sm:$0xff]  ;;  %v559_v58 = vld [vmem:[%s771_s7 + $0x18] sm:$0xff] }
   0xd   :  { %173 = vmatpush.bf16.msra.mxu2 %v447_v20  ;;  %v546_v53 = vld [vmem:[%s769_s5] sm:$0xff]  ;;  %v555_v54 = vld [vmem:[%s769_s5 + $0x48] sm:$0xff]  ;;  %v558_v59 = vld [vmem:[%s771_s7 + $0x10] sm:$0xff] }
   0xe   :  { %159 = vmatpush.bf16.msrb.mxu1 %v451_v17  ;;  %292 = vmatpush.bf16.msra.mxu0 %v555_v54  ;;  %v554_v55 = vld [vmem:[%s769_s5 + $0x40] sm:$0xff]  ;;  %v561_v56 = vld [vmem:[%s771_s7 + $0x28] sm:$0xff] }
   0xf   :  { %274 = vmatpush.bf16.msra.mxu3 %v552_v41  ;;  %v560_v57 = vld [vmem:[%s771_s7 + $0x20] sm:$0xff]  ;;  %v557_v9 = vld [vmem:[%s771_s7 + $0x8] sm:$0xff] }
  0x10   :  { %v86_v60 = vld [vmem:[%s772_s4] sm:$0x3] }
  0x11   :  { %174 = vmatpush.bf16.msra.mxu2 %v439_v26  ;;  %v88_v61 = vperm.slane %v86_v60, 0  ;;  %v89_v1 = vperm.slane %v86_v60, 1  ;;  %v556_v10 = vld [vmem:[%s771_s7] sm:$0xff] }
  0x12   :  { %160 = vmatpush.bf16.msrb.mxu1 %v443_v23  ;;  %293 = vmatpush.bf16.msra.mxu0 %v554_v55  ;;  %v564_v11 = vld [vmem:[%s770_s6] ss:$0 sm:$0xff] }
  0x13   :  { %275 = vmatpush.bf16.msra.mxu3 %v551_v42  ;;  %v565_v20 = vld [vmem:[%s773_s8] ss:$0 sm:$0xff] }
  0x15   :  { %175 = vmatpush.bf16.msra.mxu2 %v431_v33 }
  0x16   :  { %161 = vmatpush.bf16.msrb.mxu1 %v435_v27  ;;  %358 = vmatpush.bf16.msrb.mxu0 %v561_v56 }
  0x17   :  { %276 = vmatpush.bf16.msra.mxu3 %v550_v43 }
  0x19   :  { %176 = vmatpush.bf16.msra.mxu2 %v423_v39 }
  0x1a   :  { %162 = vmatpush.bf16.msrb.mxu1 %v427_v31  ;;  %359 = vmatpush.bf16.msrb.mxu0 %v560_v57 }
  0x1b   :  { %277 = vmatpush.bf16.msra.mxu3 %v549_v44 }
  0x1e   :  { %163 = vmatpush.bf16.msrb.mxu1 %v419_v37  ;;  %360 = vmatpush.bf16.msrb.mxu0 %v559_v58 }
  0x1f   :  { %278 = vmatpush.bf16.msra.mxu3 %v548_v45 }
  0x22   :  { %361 = vmatpush.bf16.msrb.mxu0 %v558_v59 }
  0x23   :  { %279 = vmatpush.bf16.msra.mxu3 %v547_v52 }
  0x26   :  { %362 = vmatpush.bf16.msrb.mxu0 %v557_v9 }
  0x27   :  { %280 = vmatpush.bf16.msra.mxu3 %v546_v53 }
  0x2a   :  { %363 = vmatpush.bf16.msrb.mxu0 %v556_v10 }
  0x86   :  { %v68_v47 = vpop.f32.mrf.mxu1 }
  0x87   :  { %v69_v48 = vadd.f32 %v563_v46, %v68_v47 }
  0x89   :  { %v72_v49 = vmax.f32 %v69_v48, 0.0 }
  0x8b   :  { %v73_v50 = vpack.c.bf16 %v72_v49, %v72_v49 }
  0x8d   :  { %464 = vmatmul.msk.bf16.vlgmr.msrb.gmra.mxu1 %vm152_vm1, %v73_v50  ;;  %465 = vmatmul.msk.bf16.vlgmr.msra.gmra.mxu2 %vm152_vm1, %v73_v50 }
  0x8e   :  { %v70_v51 = vpop.f32.mrf.mxu1 }
 0x10a   :  { %v165_v62 = vpop.f32.mrf.mxu1 }
 0x10b   :  { %v166_v63 = vadd.f32 %v165_v62, %v88_v61 }
 0x10d   :  { %v182_v0 = vmax.f32 %v166_v63, 0.0 }
 0x10f   :  { %v184_v2 = vpack.c.bf16 %v182_v0, %v182_v0 }
 0x110   :  { %v178_v3 = vpop.f32.mrf.mxu2 }
 0x111   :  { %v179_v4 = vadd.f32 %v178_v3, %v89_v1  ;;  %281 = vmatmul.bf16.vlgmr.msra.gmra.mxu3 %v184_v2 }
 0x112   :  { %v167_v5 = vpop.f32.mrf.mxu1 }
 0x113   :  { %v183_v6 = vmax.f32 %v179_v4, 0.0 }
 0x115   :  { %v185_v7 = vpack.c.bf16 %v183_v6, %v183_v6 }
 0x117   :  { %506 = vmatmul.msk.bf16.vlgmr.msra.gmra.mxu0 %vm55_vm0, %v185_v7 }
 0x118   :  { %v180_v8 = vpop.f32.mrf.mxu2 }
 0x194   :  { %v282_v12 = vpop.f32.mrf.mxu3  ;;  %v295_v13 = vpop.f32.mrf.mxu0 }
 0x195   :  { %v283_v14 = vadd.f32 %v564_v11, %v282_v12 }
 0x197   :  { %v296_v15 = vadd.f32 %v295_v13, %v283_v14 }
 0x199   :  { %v299_v16 = vmax.f32 %v296_v15, 0.0 }
 0x19b   :  { %v300_v17 = vpack.c.bf16 %v299_v16, %v299_v16 }
 0x19c   :  { %v284_v18 = vpop.f32.mrf.mxu3  ;;  %v297_v19 = vpop.f32.mrf.mxu0 }
 0x19d   :  { %531 = vmatmul.msk.bf16.vlgmr.msrb.gmra.mxu0 %vm152_vm1, %v300_v17 }
 0x21a   :  { %v365_v21 = vpop.f32.mrf.mxu0 }
 0x21b   :  { %v366_v22 = vadd.f32 %v565_v20, %v365_v21 }
 0x21d   :  { %369 = vxpose.xlu0.b32.start.end [1/1] (short) (narrow) %v366_v22, 8 }
 0x222   :  { %v367_v23 = vpop.f32.mrf.mxu0 }
 0x2c1   :  { %v385_v24 = vpop.trf.xlu0 }
 0x2c2   :  { %402 = vst.msk [vmem:[%s774_s9] sm:$0xff] %vm401_vm2, %v385_v24 }

</bundles_post_ra>
